<compile_context>
chip_gen: v7x
topology: tpu7x:2x2x1
jax: 0.10.0
libtpu: 0.0.40
codegen_flags: <defaults>
</compile_context>

<pallas_src>
import functools
import math

import jax
import jax.numpy as jnp
from jax.experimental import pallas as pl
from jax.experimental.pallas import tpu as pltpu


def _round_up(x, m):
    return (x + m - 1) // m * m


def mdn_kernel(x_ref, wh_ref, bh_ref, whd_ref, bhd_ref, out_ref, *, n_gaussians):
    """One batch tile: hidden tanh layer + fused 3-head linear.

    All three heads come out of a single MXU push and a single lane-dense
    (TB, OUT_P) bf16 store: columns [0:G) = pi, [G:2G) = sigma, [2G:3G) = mu.
    """
    G = n_gaussians
    OUT_P = out_ref.shape[-1]

    # Hidden layer: tanh(x @ Wh + bh).  bf16 operands -> f32 accumulate (MXU),
    # tanh in f32 on the EUP.
    h = jnp.dot(x_ref[...], wh_ref[...],
                preferred_element_type=jnp.float32) + bh_ref[...]
    z_h = jnp.tanh(h)                                     # (TB, HP) f32

    # Fused heads: one matmul producing [pi_logits | sigma_lin | mu | 0-pad].
    y = jnp.dot(z_h.astype(jnp.bfloat16), whd_ref[...],
                preferred_element_type=jnp.float32) + bhd_ref[...]   # (TB, OUT_P)

    # Column-only lane masks: (1, OUT_P), broadcast inside the selects.
    col = jax.lax.broadcasted_iota(jnp.int32, (1, OUT_P), dimension=1)
    is_pi = col < G
    is_sigma = (col >= G) & (col < 2 * G)

    # Single fused full-width exp pass:
    #   pi lanes:    exp(y - rowmax)   (numerically stable softmax numerator)
    #   sigma lanes: exp(y)            (this IS sigma)
    #   mu/pad lanes: exp(y), discarded by the final select (overflow-safe:
    #   a possible inf never feeds arithmetic that reaches the output).
    m = jnp.max(jnp.where(is_pi, y, -jnp.inf), axis=-1, keepdims=True)
    e_all = jnp.exp(y - jnp.where(is_pi, m, 0.0))
    denom = jnp.sum(jnp.where(is_pi, e_all, 0.0), axis=-1, keepdims=True)
    inv = pl.reciprocal(denom, approx=True)               # EUP reciprocal

    # pi lanes normalized, sigma lanes untouched exp(y), others irrelevant.
    pi_sigma = e_all * jnp.where(is_pi, inv, 1.0)

    # Single lane-dense bf16 store: [pi | sigma | mu | pad(=0, since y=0 there)].
    out = jnp.where(is_pi | is_sigma, pi_sigma, y)
    out_ref[...] = out.astype(out_ref.dtype)


def init_mdn_params(key, n_input, n_hidden, n_gaussians):
    """Deterministic init mimicking torch.nn.Linear default U[-1/sqrt(fan_in), ...].
    Weights stored as (in_features, out_features); biases as (1, out_features)."""
    def linear(key, fan_in, fan_out):
        kw, kb = jax.random.split(key)
        bound = 1.0 / math.sqrt(fan_in)
        w = jax.random.uniform(kw, (fan_in, fan_out), jnp.float32, -bound, bound)
        b = jax.random.uniform(kb, (1, fan_out), jnp.float32, -bound, bound)
        return w, b

    k_h, k_pi, k_sig, k_mu = jax.random.split(key, 4)
    w_h, b_h = linear(k_h, n_input, n_hidden)
    w_pi, b_pi = linear(k_pi, n_hidden, n_gaussians)
    w_sigma, b_sigma = linear(k_sig, n_hidden, n_gaussians)
    w_mu, b_mu = linear(k_mu, n_hidden, n_gaussians)
    return dict(w_h=w_h, b_h=b_h, w_pi=w_pi, b_pi=b_pi,
                w_sigma=w_sigma, b_sigma=b_sigma, w_mu=w_mu, b_mu=b_mu)


def pack_mdn_params(params):
    """Pad n_hidden / 3*n_gaussians up to 128 lanes, fuse the three head weights
    into one matrix, and cast matmul operands to bf16 (biases stay f32).
    Zero padding is exact: padded hidden cols give tanh(0)=0 and padded head
    rows/cols are 0, so results are unchanged.  (Kept at 128, not 256 -- the
    MXU has large slack; wider padding would only add EUP / writeback work.)"""
    n_input, n_hidden = params["w_h"].shape
    G = params["w_pi"].shape[1]
    HP = _round_up(n_hidden, 128)
    OUT_P = _round_up(3 * G, 128)

    w_h = jnp.zeros((n_input, HP), jnp.float32).at[:, :n_hidden].set(params["w_h"])
    b_h = jnp.zeros((1, HP), jnp.float32).at[:, :n_hidden].set(params["b_h"])

    w_heads = jnp.zeros((HP, OUT_P), jnp.float32)
    w_heads = w_heads.at[:n_hidden, 0 * G:1 * G].set(params["w_pi"])
    w_heads = w_heads.at[:n_hidden, 1 * G:2 * G].set(params["w_sigma"])
    w_heads = w_heads.at[:n_hidden, 2 * G:3 * G].set(params["w_mu"])

    b_heads = jnp.zeros((1, OUT_P), jnp.float32)
    b_heads = b_heads.at[:, 0 * G:1 * G].set(params["b_pi"])
    b_heads = b_heads.at[:, 1 * G:2 * G].set(params["b_sigma"])
    b_heads = b_heads.at[:, 2 * G:3 * G].set(params["b_mu"])

    return dict(
        w_h=w_h.astype(jnp.bfloat16), b_h=b_h,
        w_heads=w_heads.astype(jnp.bfloat16), b_heads=b_heads,
        n_input=n_input, n_hidden=n_hidden, n_gaussians=G, HP=HP, OUT_P=OUT_P,
    )


def _choose_tile(B, tb_target):
    """Batch tile: multiple of 16 (bf16 sublane packing), capped at tb_target,
    and halved when it would otherwise cover the whole batch so the 'parallel'
    grid axis has >=2 steps (v7x megacore sharding + DMA/compute overlap)."""
    B16 = _round_up(B, 16)
    TB = min(tb_target, B16)
    if B16 <= TB and B16 >= 32:
        TB = _round_up(B16 // 2, 16)
    B_pad = _round_up(B, TB)
    return TB, B_pad


def mdn_forward(data, packed, *, tb_target=4096):
    """data: arbitrary shape flattening to rows of n_input features.
    Returns (pi, sigma, mu), each (B, n_gaussians) float32."""
    n_input = packed["n_input"]
    G = packed["n_gaussians"]
    HP = packed["HP"]
    OUT_P = packed["OUT_P"]

    # Cast straight to bf16 (zero-padding in bf16 is exact) -> no extra f32
    # copy of the input outside the kernel.
    x = data.reshape(-1, n_input).astype(jnp.bfloat16)
    B = x.shape[0]

    TB, B_pad = _choose_tile(B, tb_target)
    if B_pad != B:
        x = jnp.pad(x, ((0, B_pad - B), (0, 0)))

    num_steps = B_pad // TB
    grid = (num_steps,)

    # VMEM budget from actual tile sizes (~2x footprint), clamped to 48 MiB so
    # there is headroom under v7x's 64 MiB physical VMEM.
    need = (2 * TB * n_input * 2             # x tile (bf16, double-buffered)
            + 2 * TB * OUT_P * 2             # out tile (bf16, double-buffered)
            + n_input * HP * 2 + HP * 4      # hidden weight + bias (resident)
            + HP * OUT_P * 2 + OUT_P * 4     # fused head weight + bias (resident)
            + TB * HP * 4 + 2 * TB * OUT_P * 4)  # in-kernel f32 intermediates
    vmem_limit = int(min(48 * 2 ** 20, max(8 * 2 ** 20, 2 * need)))

    # Optional 3-deep buffering on the streamed operands when the grid is long
    # enough for it to matter (hides the writeback on v5e's slower HBM).
    if num_steps >= 3:
        x_spec = pl.BlockSpec((TB, n_input), lambda i: (i, 0),
                              pipeline_mode=pl.Buffered(3))
        out_spec = pl.BlockSpec((TB, OUT_P), lambda i: (i, 0),
                                pipeline_mode=pl.Buffered(3))
    else:
        x_spec = pl.BlockSpec((TB, n_input), lambda i: (i, 0))
        out_spec = pl.BlockSpec((TB, OUT_P), lambda i: (i, 0))

    kernel = functools.partial(mdn_kernel, n_gaussians=G)

    fused = pl.pallas_call(
        kernel,
        out_shape=jax.ShapeDtypeStruct((B_pad, OUT_P), jnp.bfloat16),
        grid=grid,
        in_specs=[
            x_spec,                                           # x: batch-tiled
            pl.BlockSpec((n_input, HP), lambda i: (0, 0)),    # resident weights
            pl.BlockSpec((1, HP), lambda i: (0, 0)),
            pl.BlockSpec((HP, OUT_P), lambda i: (0, 0)),
            pl.BlockSpec((1, OUT_P), lambda i: (0, 0)),
        ],
        out_specs=out_spec,
        compiler_params=pltpu.CompilerParams(
            dimension_semantics=("parallel",),
            vmem_limit_bytes=vmem_limit),
    )(x, packed["w_h"], packed["b_h"], packed["w_heads"], packed["b_heads"])

    # Slice heads out of the bf16 slab (half the re-read cost of the old f32
    # slab) and upcast for consumers that expect f32.
    fused = fused[:B].astype(jnp.float32)
    pi = fused[:, 0 * G:1 * G]
    sigma = fused[:, 1 * G:2 * G]
    mu = fused[:, 2 * G:3 * G]
    return pi, sigma, mu


def mdn_forward_ref(data, params):
    """Pure-JAX f32 reference for correctness checking."""
    n_input = params["w_h"].shape[0]
    x = data.reshape(-1, n_input).astype(jnp.float32)
    z_h = jnp.tanh(x @ params["w_h"] + params["b_h"])
    pi = jax.nn.softmax(z_h @ params["w_pi"] + params["b_pi"], axis=-1)
    sigma = jnp.exp(z_h @ params["w_sigma"] + params["b_sigma"])
    mu = z_h @ params["w_mu"] + params["b_mu"]
    return pi, sigma, mu


if __name__ == "__main__":
    n_input, n_hidden, n_gaussians = 16, 32, 8

    key = jax.random.PRNGKey(0)
    k_params, k_data = jax.random.split(key)
    params = init_mdn_params(k_params, n_input, n_hidden, n_gaussians)
    packed = pack_mdn_params(params)

    # data: (2, 4, 16) -> forward views it as (-1, n_input) = (8, 16)
    data = jax.random.normal(k_data, (2, 4, n_input), jnp.float32)

    pi, sigma, mu = mdn_forward(data, packed)
    jax.block_until_ready((pi, sigma, mu))

    # Sanity check vs pure-JAX f32 reference (tolerance loosened for bf16
    # matmul operands, bf16 output slab and approx reciprocal in the kernel).
    pi_r, sigma_r, mu_r = mdn_forward_ref(data, params)
    assert pi.shape == sigma.shape == mu.shape == (8, n_gaussians)
    assert jnp.allclose(pi, pi_r, atol=5e-2, rtol=5e-2)
    assert jnp.allclose(sigma, sigma_r, atol=5e-2, rtol=5e-2)
    assert jnp.allclose(mu, mu_r, atol=5e-2, rtol=5e-2)
    assert jnp.allclose(jnp.sum(pi, axis=-1), 1.0, atol=1e-2)

    print("KERNEL_OK")
</pallas_src>

<mosaic_0001>
module attributes {stable_mosaic.version = 11 : i64} {
  func.func @mdn_kernel(%arg0: i32, %arg1: memref<16x16xbf16, #tpu.memory_space<vmem>>, %arg2: memref<16x128xbf16, #tpu.memory_space<vmem>>, %arg3: memref<1x128xf32, #tpu.memory_space<vmem>>, %arg4: memref<128x128xbf16, #tpu.memory_space<vmem>>, %arg5: memref<1x128xf32, #tpu.memory_space<vmem>>, %arg6: memref<16x128xbf16, #tpu.memory_space<vmem>>) attributes {dimension_semantics = [#tpu.dimension_semantics<parallel>], iteration_bounds = array<i64: 1>, scalar_prefetch = 0 : i64, scratch_operands = 0 : i64, tpu.core_type = #tpu.core_type<tc>, window_params = [{transform_indices = @transform_0, window_bounds = array<i64: 16, 16>}, {pipeline_mode = #tpu.pipeline_mode<synchronous>, transform_indices = @transform_1, window_bounds = array<i64: 16, 128>}, {pipeline_mode = #tpu.pipeline_mode<synchronous>, transform_indices = @transform_2, window_bounds = array<i64: 1, 128>}, {pipeline_mode = #tpu.pipeline_mode<synchronous>, transform_indices = @transform_3, window_bounds = array<i64: 128, 128>}, {pipeline_mode = #tpu.pipeline_mode<synchronous>, transform_indices = @transform_4, window_bounds = array<i64: 1, 128>}, {transform_indices = @transform_5, window_bounds = array<i64: 16, 128>}]} {
    %c0 = arith.constant 0 : index
    %c0_0 = arith.constant 0 : index
    %0 = vector.load %arg1[%c0, %c0_0] : memref<16x16xbf16, #tpu.memory_space<vmem>>, vector<16x16xbf16>
    %c0_1 = arith.constant 0 : index
    %c0_2 = arith.constant 0 : index
    %1 = vector.load %arg2[%c0_1, %c0_2] : memref<16x128xbf16, #tpu.memory_space<vmem>>, vector<16x128xbf16>
    %cst = arith.constant dense<0.000000e+00> : vector<16x128xf32>
    %2 = tpu.matmul %0, %1, %cst {dimension_numbers = #tpu.dot_dimension_numbers<[1], [0], [0], [1], [0, 0, 1, 1], [], []>} : vector<16x16xbf16>, vector<16x128xbf16>, vector<16x128xf32> -> vector<16x128xf32>
    %c0_3 = arith.constant 0 : index
    %c0_4 = arith.constant 0 : index
    %3 = vector.load %arg3[%c0_3, %c0_4] : memref<1x128xf32, #tpu.memory_space<vmem>>, vector<1x128xf32>
    %4 = vector.broadcast %3 : vector<1x128xf32> to vector<16x128xf32>
    %5 = arith.addf %2, %4 : vector<16x128xf32>
    %6 = math.tanh %5 : vector<16x128xf32>
    %7 = arith.truncf %6 : vector<16x128xf32> to vector<16x128xbf16>
    %c0_5 = arith.constant 0 : index
    %c0_6 = arith.constant 0 : index
    %8 = vector.load %arg4[%c0_5, %c0_6] : memref<128x128xbf16, #tpu.memory_space<vmem>>, vector<128x128xbf16>
    %cst_7 = arith.constant dense<0.000000e+00> : vector<16x128xf32>
    %9 = tpu.matmul %7, %8, %cst_7 {dimension_numbers = #tpu.dot_dimension_numbers<[1], [0], [0], [1], [0, 0, 1, 1], [], []>} : vector<16x128xbf16>, vector<128x128xbf16>, vector<16x128xf32> -> vector<16x128xf32>
    %c0_8 = arith.constant 0 : index
    %c0_9 = arith.constant 0 : index
    %10 = vector.load %arg5[%c0_8, %c0_9] : memref<1x128xf32, #tpu.memory_space<vmem>>, vector<1x128xf32>
    %11 = vector.broadcast %10 : vector<1x128xf32> to vector<16x128xf32>
    %12 = arith.addf %9, %11 : vector<16x128xf32>
    %13 = tpu.iota {dimensions = array<i32: 1>} : vector<1x128xi32>
    %c8_i32 = arith.constant 8 : i32
    %14 = vector.broadcast %c8_i32 : i32 to vector<1x128xi32>
    %15 = arith.cmpi slt, %13, %14 : vector<1x128xi32>
    %c8_i32_10 = arith.constant 8 : i32
    %16 = vector.broadcast %c8_i32_10 : i32 to vector<1x128xi32>
    %17 = arith.cmpi sge, %13, %16 : vector<1x128xi32>
    %c16_i32 = arith.constant 16 : i32
    %18 = vector.broadcast %c16_i32 : i32 to vector<1x128xi32>
    %19 = arith.cmpi slt, %13, %18 : vector<1x128xi32>
    %20 = arith.andi %17, %19 : vector<1x128xi1>
    %cst_11 = arith.constant 0xFF800000 : f32
    %21 = vector.shape_cast %15 : vector<1x128xi1> to vector<1x128xi1>
    %22 = vector.broadcast %21 : vector<1x128xi1> to vector<16x128xi1>
    %23 = vector.broadcast %cst_11 : f32 to vector<16x128xf32>
    %24 = arith.select %22, %12, %23 : vector<16x128xi1>, vector<16x128xf32>
    %cst_12 = arith.constant dense<0xFF800000> : vector<16xf32>
    %25 = vector.multi_reduction <maximumf>, %24, %cst_12 [1] : vector<16x128xf32> to vector<16xf32>
    %26 = vector.shape_cast %25 : vector<16xf32> to vector<16x1xf32>
    %cst_13 = arith.constant 0.000000e+00 : f32
    %27 = vector.shape_cast %15 : vector<1x128xi1> to vector<1x128xi1>
    %28 = vector.broadcast %27 : vector<1x128xi1> to vector<16x128xi1>
    %29 = vector.shape_cast %26 : vector<16x1xf32> to vector<16x1xf32>
    %30 = vector.broadcast %29 : vector<16x1xf32> to vector<16x128xf32>
    %31 = vector.broadcast %cst_13 : f32 to vector<16x128xf32>
    %32 = arith.select %28, %30, %31 : vector<16x128xi1>, vector<16x128xf32>
    %33 = arith.subf %12, %32 : vector<16x128xf32>
    %34 = math.exp %33 : vector<16x128xf32>
    %cst_14 = arith.constant 0.000000e+00 : f32
    %35 = vector.shape_cast %15 : vector<1x128xi1> to vector<1x128xi1>
    %36 = vector.broadcast %35 : vector<1x128xi1> to vector<16x128xi1>
    %37 = vector.broadcast %cst_14 : f32 to vector<16x128xf32>
    %38 = arith.select %36, %34, %37 : vector<16x128xi1>, vector<16x128xf32>
    %cst_15 = arith.constant dense<0.000000e+00> : vector<16xf32>
    %39 = vector.multi_reduction <add>, %38, %cst_15 [1] : vector<16x128xf32> to vector<16xf32>
    %40 = vector.shape_cast %39 : vector<16xf32> to vector<16x1xf32>
    %41 = tpu.reciprocal %40 {approx = true} : vector<16x1xf32> -> vector<16x1xf32>
    %cst_16 = arith.constant 1.000000e+00 : f32
    %42 = vector.shape_cast %15 : vector<1x128xi1> to vector<1x128xi1>
    %43 = vector.broadcast %42 : vector<1x128xi1> to vector<16x128xi1>
    %44 = vector.shape_cast %41 : vector<16x1xf32> to vector<16x1xf32>
    %45 = vector.broadcast %44 : vector<16x1xf32> to vector<16x128xf32>
    %46 = vector.broadcast %cst_16 : f32 to vector<16x128xf32>
    %47 = arith.select %43, %45, %46 : vector<16x128xi1>, vector<16x128xf32>
    %48 = arith.mulf %34, %47 : vector<16x128xf32>
    %49 = arith.ori %15, %20 : vector<1x128xi1>
    %50 = vector.shape_cast %49 : vector<1x128xi1> to vector<1x128xi1>
    %51 = vector.broadcast %50 : vector<1x128xi1> to vector<16x128xi1>
    %52 = arith.select %51, %48, %12 : vector<16x128xi1>, vector<16x128xf32>
    %53 = arith.truncf %52 : vector<16x128xf32> to vector<16x128xbf16>
    %c0_17 = arith.constant 0 : index
    %c0_18 = arith.constant 0 : index
    %54 = vector.load %arg6[%c0_17, %c0_18] : memref<16x128xbf16, #tpu.memory_space<vmem>>, vector<16x128xbf16>
    tpu.vector_store %arg6[%c0_17, %c0_18], %53 {strides = array<i32>} : memref<16x128xbf16, #tpu.memory_space<vmem>>, vector<16x128xbf16>,
    return
  }
  func.func @transform_0(%arg0: i32) -> (i32, i32) {
    %c0_i32 = arith.constant 0 : i32
    %c0_i32_0 = arith.constant 0 : i32
    return %arg0, %c0_i32 : i32, i32
  }
  func.func @transform_1(%arg0: i32) -> (i32, i32) {
    %c0_i32 = arith.constant 0 : i32
    %c0_i32_0 = arith.constant 0 : i32
    %c0_i32_1 = arith.constant 0 : i32
    return %c0_i32, %c0_i32_0 : i32, i32
  }
  func.func @transform_2(%arg0: i32) -> (i32, i32) {
    %c0_i32 = arith.constant 0 : i32
    %c0_i32_0 = arith.constant 0 : i32
    %c0_i32_1 = arith.constant 0 : i32
    return %c0_i32, %c0_i32_0 : i32, i32
  }
  func.func @transform_3(%arg0: i32) -> (i32, i32) {
    %c0_i32 = arith.constant 0 : i32
    %c0_i32_0 = arith.constant 0 : i32
    %c0_i32_1 = arith.constant 0 : i32
    return %c0_i32, %c0_i32_0 : i32, i32
  }
  func.func @transform_4(%arg0: i32) -> (i32, i32) {
    %c0_i32 = arith.constant 0 : i32
    %c0_i32_0 = arith.constant 0 : i32
    %c0_i32_1 = arith.constant 0 : i32
    return %c0_i32, %c0_i32_0 : i32, i32
  }
  func.func @transform_5(%arg0: i32) -> (i32, i32) {
    %c0_i32 = arith.constant 0 : i32
    %c0_i32_0 = arith.constant 0 : i32
    return %arg0, %c0_i32 : i32, i32
  }
}

</mosaic_0001>

<bundles_post_ra>
// kernel: tpu_custom_call.1
= control target key start
LH: loop header
LB: loop body
LE: loop exit
PB: predicated region body
PF: predicated region fallthrough
CT: control target
= control target key end

     0   :  { %10 = vsyncpa [#allocation3], 0  ;;  %s615_s0 = inlined_call_operand.hbm [shape: bf16[16,16], index: 0, kind: input, shape index: {}]   ;;  %s616_s1 = inlined_call_operand.hbm [shape: bf16[16,128], index: 1, kind: input, shape index: {}]   ;;  %s617_s2 = inlined_call_operand.vmem [shape: f32[1,128], index: 2, kind: input, shape index: {}]   ;;  %s618_s3 = inlined_call_operand.hbm [shape: bf16[128,128], index: 3, kind: input, shape index: {}]   ;;  %s619_s4 = inlined_call_operand.vmem [shape: f32[1,128], index: 4, kind: input, shape index: {}]   ;;  %s620_s5 = inlined_call_operand.hbm [shape: bf16[16,128], index: 5, kind: output, shape index: {}]  }
   0x1   :  { %11 = vsyncpa [#allocation6], 0 }
   0x2   :  { %12 = vsyncpa [#allocation4], 0  ;;  %s495_s18 = smov [#allocation5]   ;;  %s496_s20 = smov [#allocation2]  }
   0x3   :  { %s30_s19 = sshll.u32 %s495_s18, 4  ;;  %s18_s21 = sshll.u32 %s496_s20, 4  ;;  %s31_s19 = int_to_ptr.vmem [resolvable:$true] %s30_s19  ;;  %s533_s21 = int_to_ptr.vmem [resolvable:$true] %s18_s21 }
   0x4   :  { %s401_s24 = scalar_lea.hbm %s616_s1, 128 }
   0x5   :  { %p402_p0 = scmp.ne.s32.totalorder %s616_s1, %s401_s24  ;;  %p405_p1 = scmp.lt.u32.totalorder %s401_s24, %s616_s1 }
   0x7   :  { %p407_p2 = pnand %p405_p1, %p402_p0 }
   0x9   :  { %410 = shalt.err (!%p407_p2)
}
   0xa   :  { %s411_s29 = scalar_lea.vmem %s31_s19, 128  ;;  %p416_p4 = scmp.lt.s32.totalorder %s31_s19, %s31_s19 }
   0xb   :  { %p412_p3 = scmp.ne.s32.totalorder %s31_s19, %s411_s29  ;;  %p417_p5 = scmp.lt.s32.totalorder %s411_s29, %s411_s29 }
   0xd   :  { %p418_p6 = por %p417_p5, %p416_p4 }
   0xf   :  { %p419_p7 = pnand %p418_p6, %p412_p3 }
  0x11   :  { %422 = shalt.err (!%p419_p7)
}
  0x12   :  { %s497_s30 = smov 64   ;;  %s498_s6 = smov 4  }
  0x13   :  { %36 = dma.hbm_to_vmem [thread:$0]  %s616_s1, 128, %s31_s19, [#allocation6], %s497_s30, %s497_s30, %s498_s6  }
  0x14   :  { %s423_s11 = scalar_lea.hbm %s615_s0, 128 }
  0x15   :  { %p424_p8 = scmp.ne.s32.totalorder %s615_s0, %s423_s11  ;;  %p427_p9 = scmp.lt.u32.totalorder %s423_s11, %s615_s0 }
  0x17   :  { %p429_p10 = pnand %p427_p9, %p424_p8 }
  0x19   :  { %432 = shalt.err (!%p429_p10)
}
  0x1a   :  { %s433_s16 = scalar_lea.vmem %s533_s21, 128  ;;  %p438_p12 = scmp.lt.s32.totalorder %s533_s21, %s533_s21 }
  0x1b   :  { %p434_p11 = scmp.ne.s32.totalorder %s533_s21, %s433_s16  ;;  %p439_p13 = scmp.lt.s32.totalorder %s433_s16, %s433_s16 }
  0x1d   :  { %p440_p0 = por %p439_p13, %p438_p12 }
  0x1f   :  { %p441_p1 = pnand %p440_p0, %p434_p11 }
  0x21   :  { %444 = shalt.err (!%p441_p1)
}
  0x22   :  { %24 = dma.hbm_to_vmem [thread:$0]  %s615_s0, 128, %s533_s21, [#allocation3], %s497_s30, %s497_s30, %s498_s6  }
  0x23   :  { %s499_s18 = smov [#allocation7]   ;;  %s445_s23 = scalar_lea.hbm %s618_s3, 1024 }
  0x24   :  { %s44_s19 = sshll.u32 %s499_s18, 4  ;;  %p446_p2 = scmp.ne.s32.totalorder %s618_s3, %s445_s23  ;;  %s45_s19 = int_to_ptr.vmem [resolvable:$true] %s44_s19 }
  0x25   :  { %p449_p3 = scmp.lt.u32.totalorder %s445_s23, %s618_s3 }
  0x27   :  { %p451_p4 = pnand %p449_p3, %p446_p2 }
  0x29   :  { %454 = shalt.err (!%p451_p4)
}
  0x2a   :  { %s455_s28 = scalar_lea.vmem %s45_s19, 1024  ;;  %p460_p6 = scmp.lt.s32.totalorder %s45_s19, %s45_s19 }
  0x2b   :  { %p456_p5 = scmp.ne.s32.totalorder %s45_s19, %s455_s28  ;;  %p461_p7 = scmp.lt.s32.totalorder %s455_s28, %s455_s28 }
  0x2d   :  { %p462_p8 = por %p461_p7, %p460_p6 }
  0x2f   :  { %p463_p9 = pnand %p462_p8, %p456_p5 }
  0x31   :  { %466 = shalt.err (!%p463_p9)
}
  0x32   :  { %50 = dma.hbm_to_vmem [thread:$0]  %s618_s3, 1024, %s45_s19, [#allocation6], %s497_s30, %s497_s30, %s498_s6  }
  0x33   :  { %489 = dma.done.wait [#allocation3], 128  }
  0x34   :  { %490 = vsyncadd [#allocation3], 4294967168 }
  0x35   :  { %491 = dma.done.wait [#allocation6], 1152  }
  0x36   :  { %492 = vsyncadd [#allocation6], 4294966144  ;;  %v500_v0 = vmov 0.0   ;;  %vm501_vm0 = vmmov 0   ;;  %v379_v1 = vld [vmem:[#allocation5] sm:$0xff]   ;;  %v380_v2 = vld [vmem:[#allocation2] sm:$0xff]   ;;  %v245_v21 = vlaneseq }
  0x37   :  { %345 = vmatprep.subr.bf16.mxu0 %v500_v0  ;;  %347 = vmatprep.mubr.msk.bf16.mxu0 %vm501_vm0, %v500_v0  ;;  %vm85_vm1 = vcmask 130048   ;;  %v381_v3 = vld [vmem:[#allocation7] sm:$0xff]   ;;  %v382_v4 = vld [vmem:[#allocation7 + $0x8] sm:$0xff]   ;;  %v383_v5 = vld [vmem:[#allocation7 + $0x10] sm:$0xff]  }
  0x38   :  { %351 = vmatprep.subr.bf16.mxu1 %v500_v0  ;;  %367 = vmatprep.mubr.msk.bf16.mxu1 %vm501_vm0, %v500_v0  ;;  %v384_v6 = vld [vmem:[#allocation7 + $0x18] sm:$0xff]   ;;  %v385_v7 = vld [vmem:[#allocation7 + $0x20] sm:$0xff]   ;;  %v386_v8 = vld [vmem:[#allocation7 + $0x28] sm:$0xff]   ;;  %v246_v22 = vand.u32 127, %v245_v21 }
  0x39   :  { %346 = vmatpush3.bf16.msra.mxu0 %v379_v1  ;;  %352 = vmatpush3.bf16.msra.mxu1 %v381_v3  ;;  %v387_v9 = vld [vmem:[#allocation7 + $0x30] sm:$0xff]   ;;  %v388_v10 = vld [vmem:[#allocation7 + $0x38] sm:$0xff]  }
  0x3a   :  { %353 = vmatprep.subr.bf16.mxu1 %v500_v0  ;;  %v312_v11 = vld [vmem:[%s617_s2] ss:$0 sm:$0xff]  ;;  %vm247_vm2 = vcmp.lt.s32.totalorder %v246_v22, 8  ;;  %vm248_vm3 = vcmp.ge.s32.totalorder %v246_v22, 8  ;;  %vm249_vm4 = vcmp.lt.s32.totalorder %v246_v22, 16  ;;  %s502_s2 = smov [#allocation8]  }
  0x3b   :  { %v316_v23 = vld [vmem:[%s619_s4] ss:$0 sm:$0xff]  ;;  %vm250_vm5 = vmand %vm248_vm3, %vm249_vm4  ;;  %s299_s4 = sshll.u32 %s502_s2, 4  ;;  %s300_s4 = int_to_ptr.vmem [resolvable:$true] %s299_s4 }
  0x3c   :  { %348 = vmatmul.mubr.msk.bf16.vlgmr.msra.gmra.mrb[0].mxu0 %vm85_vm1, %v380_v2  ;;  %vm279_vm6 = vmor %vm247_vm2, %vm250_vm5  ;;  %s467_s9 = scalar_lea.vmem %s300_s4, 128  ;;  %p472_p11 = scmp.lt.s32.totalorder %s300_s4, %s300_s4 }
  0x3d   :  { %354 = vmatpush3.bf16.msra.mxu1 %v382_v4  ;;  %p468_p10 = scmp.ne.s32.totalorder %s300_s4, %s467_s9  ;;  %p473_p12 = scmp.lt.s32.totalorder %s467_s9, %s467_s9 }
  0x3e   :  { %355 = vmatprep.subr.bf16.mxu1 %v500_v0 }
  0x3f   :  { %p474_p13 = por %p473_p12, %p472_p11 }
  0x41   :  { %356 = vmatpush3.bf16.msra.mxu1 %v383_v5  ;;  %p475_p0 = pnand %p474_p13, %p468_p10 }
  0x42   :  { %357 = vmatprep.subr.bf16.mxu1 %v500_v0 }
  0x45   :  { %358 = vmatpush3.bf16.msra.mxu1 %v384_v6 }
  0x46   :  { %359 = vmatprep.subr.bf16.mxu1 %v500_v0 }
  0x49   :  { %360 = vmatpush3.bf16.msra.mxu1 %v385_v7 }
  0x4a   :  { %361 = vmatprep.subr.bf16.mxu1 %v500_v0 }
  0x4d   :  { %362 = vmatpush3.bf16.msra.mxu1 %v386_v8 }
  0x4e   :  { %363 = vmatprep.subr.bf16.mxu1 %v500_v0 }
  0x51   :  { %364 = vmatpush3.bf16.msra.mxu1 %v387_v9 }
  0x52   :  { %365 = vmatprep.subr.bf16.mxu1 %v500_v0 }
  0x55   :  { %366 = vmatpush3.bf16.msra.mxu1 %v388_v10 }
 0x10f   :  { %v123_v12 = vpop.f32.mrb[0].mxu0 }
 0x110   :  { %v124_v13 = vadd.f32 %v312_v11, %v123_v12  ;;  %v349_v14 = vpop.f32.mrb[1].mxu0 }
 0x111   :  { %v126_v15 = vpop.f32.mrb[2].mxu0 }
 0x112   :  { %v127_v16 = vadd.f32 %v312_v11, %v126_v15  ;;  %v350_v17 = vpop.f32.mrb[3].mxu0  ;;  %389 = vtanh.f32 %v124_v13 }
 0x114   :  { %391 = vtanh.f32 %v127_v16 }
 0x11c   :  { %v390_v18 = vpop.eup %389 }
 0x11e   :  { %v392_v19 = vpop.eup %391 }
 0x11f   :  { %v132_v20 = vpack.c.bf16 %v392_v19, %v390_v18 }
 0x121   :  { %368 = vmatmul.mubr.bf16.vlgmr.msra.gmra.mrb[0].mxu1 %v132_v20 }
 0x1f4   :  { %v238_v24 = vpop.f32.mrb[0].mxu1 }
 0x1f5   :  { %v239_v25 = vadd.f32 %v316_v23, %v238_v24  ;;  %v369_v26 = vpop.f32.mrb[1].mxu1 }
 0x1f6   :  { %v241_v27 = vpop.f32.mrb[2].mxu1 }
 0x1f7   :  { %v242_v28 = vadd.f32 %v316_v23, %v241_v27  ;;  %v370_v29 = vpop.f32.mrb[3].mxu1  ;;  %v253_v30 = vsel %vm247_vm2, %v239_v25, -inf }
 0x1f8   :  { %255 = vmax.xlane.f32.xlu0 %v253_v30 }
 0x1f9   :  { %v254_v31 = vsel %vm247_vm2, %v242_v28, -inf }
 0x1fc   :  { %257 = vmax.xlane.f32.xlu0 %v254_v31 }
 0x285   :  { %v256_v32 = vpop.xlane.xlu0 %255 }
 0x286   :  { %v259_v33 = vsel %vm247_vm2, %v256_v32, 0.0 }
 0x287   :  { %v261_v34 = vsub.f32 %v239_v25, %v259_v33 }
 0x289   :  { %v263_v35 = vmul.f32 1.442695, %v261_v34  ;;  %v258_v36 = vpop.xlane.xlu0 %257 }
 0x28a   :  { %v260_v37 = vsel %vm247_vm2, %v258_v36, 0.0 }
 0x28b   :  { %393 = vpow2.f32 %v263_v35  ;;  %v262_v38 = vsub.f32 %v242_v28, %v260_v37 }
 0x28d   :  { %v265_v39 = vmul.f32 1.442695, %v262_v38 }
 0x28f   :  { %395 = vpow2.f32 %v265_v39 }
 0x295   :  { %v394_v40 = vpop.eup %393 }
 0x296   :  { %v267_v41 = vsel %vm247_vm2, %v394_v40, 0.0 }
 0x297   :  { %269 = vadd.xlane.f32.xlu1 %v267_v41 }
 0x299   :  { %v396_v42 = vpop.eup %395 }
 0x29a   :  { %v268_v43 = vsel %vm247_vm2, %v396_v42, 0.0 }
 0x29b   :  { %271 = vadd.xlane.f32.xlu1 %v268_v43 }
 0x324   :  { %v270_v44 = vpop.xlane.xlu1 %269 }
 0x325   :  { %397 = vrcp.f32 %v270_v44 }
 0x328   :  { %v272_v45 = vpop.xlane.xlu1 %271 }
 0x329   :  { %399 = vrcp.f32 %v272_v45 }
 0x32f   :  { %v398_v46 = vpop.eup %397 }
 0x330   :  { %v275_v47 = vsel %vm247_vm2, %v398_v46, 1.0 }
 0x331   :  { %v277_v49 = vmul.f32 %v394_v40, %v275_v47 }
 0x333   :  { %v400_v48 = vpop.eup %399  ;;  %v282_v52 = vsel %vm279_vm6, %v277_v49, %v239_v25 }
 0x334   :  { %v276_v50 = vsel %vm247_vm2, %v400_v48, 1.0 }
 0x335   :  { %v278_v51 = vmul.f32 %v396_v42, %v276_v50 }
 0x337   :  { %v283_v53 = vsel %vm279_vm6, %v278_v51, %v242_v28 }
 0x338   :  { %v332_v54 = vpack.c.bf16 %v283_v53, %v282_v52 }
 0x33a   :  { %333 = vst [vmem:[#allocation8] sm:$0xff] %v332_v54  }
 0x33b   :  { %478 = shalt.err (!%p475_p0)
}
 0x33c   :  { %s479_s12 = scalar_lea.hbm %s620_s5, 128 }
 0x33d   :  { %p480_p1 = scmp.ne.s32.totalorder %s620_s5, %s479_s12  ;;  %p483_p2 = scmp.lt.u32.totalorder %s479_s12, %s620_s5 }
 0x33f   :  { %p485_p3 = pnand %p483_p2, %p480_p1 }
 0x341   :  { %488 = shalt.err (!%p485_p3)
}
 0x342   :  { %305 = dma.vmem_to_hbm [thread:$0]  %s300_s4, 128, %s620_s5, [#allocation4], %s497_s30, %s497_s30, %s498_s6  }
 0x343   :  { %493 = dma.done.wait [#allocation4], 128  }
 0x344   :  { %494 = vsyncadd [#allocation4], 4294967168 }
 0x345   :  { %309 = vsyncpa [#allocation3], 1 }
 0x346   :  { %310 = vsyncpa [#allocation6], 1 }
 0x347   :  { %311 = vsyncpa [#allocation4], 1 }

</bundles_post_ra>
